<compile_context>
chip_gen: v7x
topology: tpu7x:2x2x1
jax: 0.10.0
libtpu: 0.0.40
codegen_flags: <defaults>
</compile_context>

<pallas_src>
import functools

import jax
import jax.numpy as jnp
from jax.experimental import pallas as pl
from jax.experimental.pallas import tpu as pltpu


def _round_up(n, m):
    return ((n + m - 1) // m) * m


# Scoped-VMEM limit requested from Mosaic. 32 MiB is safe on every generation
# (v5e/v6e: 128 MiB physical; v7x: 64 MiB physical, 32 MiB scoped default).
_VMEM_LIMIT_BYTES = 32 * 1024 * 1024
# Budget used to size the batch tile; leaves headroom under the limit for the
# compiler's internal scratch.
_VMEM_TILE_BUDGET_BYTES = 24 * 1024 * 1024


def _pick_batch_tile(B, input_dim, inter_dim, hidden_dim, tile_cap):
    """VMEM-budget-aware batch tile and grid-step count."""
    B8 = _round_up(max(B, 1), 8)
    # Weights/biases, conservatively counted double-buffered.
    weight_bytes = 2 * 4 * (2 * input_dim * inter_dim + 2 * inter_dim * hidden_dim
                            + 2 * inter_dim + hidden_dim + input_dim)
    # Per-batch-row VMEM: double-buffered x/out/h tiles + fp32 intermediates.
    per_row_bytes = 4 * (2 * input_dim + 2 * input_dim + 2 * hidden_dim + 2 * inter_dim)
    budget_rows = max((_VMEM_TILE_BUDGET_BYTES - weight_bytes) // per_row_bytes, 8)
    cap = max(8, (min(tile_cap, budget_rows) // 8) * 8)
    # >= 2 grid steps whenever the batch allows it so v7x's two TensorCores
    # both get work via dimension_semantics=("parallel",). The extra step is
    # ~0.35 us on single-TC chips.
    min_steps = 2 if B8 >= 16 else 1
    steps = max(min_steps, pl.cdiv(B8, cap))
    tile = min(_round_up(pl.cdiv(B, steps), 8), cap)
    b_pad = tile * steps
    return tile, steps, b_pad


def _ae_kernel(x_ref,
               w1_ref, b1_ref, w2_ref, b2_ref,
               w3_ref, b3_ref, w4_ref, b4_ref,
               out_ref, h_ref, *, compute_dtype):
    cd = compute_dtype
    x = x_ref[...].astype(cd)

    # Hoist bias reads (single (1, N) load each; broadcast happens once).
    b1 = b1_ref[...]
    b2 = b2_ref[...]
    b3 = b3_ref[...]
    b4 = b4_ref[...]

    # ---- encoder ----  (fp32 accumulation on the MXU regardless of cd)
    a1 = jnp.dot(x, w1_ref[...], preferred_element_type=jnp.float32) + b1
    a1 = jnp.maximum(a1, 0.0)                      # ReLU
    h = jnp.dot(a1.astype(cd), w2_ref[...], preferred_element_type=jnp.float32) + b2
    h_ref[...] = h.astype(h_ref.dtype)             # true-width store (no lane pad)

    # ---- decoder ----
    a2 = jnp.dot(h.astype(cd), w3_ref[...], preferred_element_type=jnp.float32) + b3
    a2 = jnp.maximum(a2, 0.0)                      # ReLU
    out = jnp.dot(a2.astype(cd), w4_ref[...], preferred_element_type=jnp.float32) + b4
    out_ref[...] = out.astype(out_ref.dtype)


def _const_spec(shape):
    # Constant index_map: loop-invariant operand, not re-DMA'd per grid step.
    return pl.BlockSpec(shape, lambda i: tuple(0 for _ in shape))


@functools.partial(jax.jit, static_argnames=("use_bf16", "batch_tile_cap"))
def autoencoder_dekm_forward(x, params, *, use_bf16=False, batch_tile_cap=4096):
    """Runs the DEKM autoencoder forward. Returns (out, h), matching PyTorch."""
    (w1, b1), (w2, b2), (w3, b3), (w4, b4) = params
    B, input_dim = x.shape
    inter_dim = w1.shape[1]
    hidden_dim = w2.shape[1]

    if use_bf16:
        # bf16 matmul operands, fp32 accumulation. Pre-cast weights once per
        # call (halves weight HBM traffic + VMEM); activations cast in-kernel.
        w1, w2, w3, w4 = (w.astype(jnp.bfloat16) for w in (w1, w2, w3, w4))
    compute_dtype = jnp.bfloat16 if use_bf16 else jnp.float32

    tile, steps, B_pad = _pick_batch_tile(B, input_dim, inter_dim, hidden_dim,
                                          batch_tile_cap)
    if B_pad != B:
        x_in = jnp.zeros((B_pad, input_dim), x.dtype).at[:B].set(x)
    else:
        x_in = x

    kernel = functools.partial(_ae_kernel, compute_dtype=compute_dtype)

    in_specs = [
        pl.BlockSpec((tile, input_dim), lambda i: (i, 0)),   # x tile
        _const_spec(w1.shape), _const_spec(b1.shape),
        _const_spec(w2.shape), _const_spec(b2.shape),
        _const_spec(w3.shape), _const_spec(b3.shape),
        _const_spec(w4.shape), _const_spec(b4.shape),
    ]
    out_specs = [
        pl.BlockSpec((tile, input_dim), lambda i: (i, 0)),    # out
        pl.BlockSpec((tile, hidden_dim), lambda i: (i, 0)),   # h (true width)
    ]

    out_p, h_p = pl.pallas_call(
        kernel,
        out_shape=(
            jax.ShapeDtypeStruct((B_pad, input_dim), x.dtype),
            jax.ShapeDtypeStruct((B_pad, hidden_dim), x.dtype),
        ),
        grid_spec=pltpu.PrefetchScalarGridSpec(
            num_scalar_prefetch=0,
            grid=(steps,),
            in_specs=in_specs,
            out_specs=out_specs,
        ),
        compiler_params=pltpu.CompilerParams(
            dimension_semantics=("parallel",),
            vmem_limit_bytes=_VMEM_LIMIT_BYTES),
    )(x_in, w1, b1, w2, b2, w3, b3, w4, b4)

    # Slice away batch padding (padded rows carry ReLU(b1)-propagated garbage
    # and must never be exposed). No hidden-lane slice needed anymore.
    if B_pad != B:
        out_p = out_p[:B]
        h_p = h_p[:B]
    return out_p, h_p


def init_params(key, input_dim, hidden_dim_ae):
    """Deterministic init matching the PyTorch module's layer shapes.

    Mimics nn.Linear default init: U(-1/sqrt(fan_in), 1/sqrt(fan_in)).
    Weights are stored as [in_features, out_features].
    """
    intermediate_dim1 = 128
    if 0 < input_dim < intermediate_dim1 / 2:
        intermediate_dim1 = max(hidden_dim_ae * 2, input_dim * 2, 1)
    elif input_dim == 0:
        intermediate_dim1 = max(hidden_dim_ae * 2, 1)
    if hidden_dim_ae <= 0:
        hidden_dim_ae = 1
    if intermediate_dim1 < hidden_dim_ae and input_dim > hidden_dim_ae:
        intermediate_dim1 = hidden_dim_ae * 2
    # TODO(synk): simplified single-Linear AE path (input_dim <= hidden_dim_ae)
    # is not implemented; this script targets the full encoder/decoder path.
    assert input_dim > hidden_dim_ae, "this script targets the full (non-simplified) AE path"

    dims = [
        (input_dim, intermediate_dim1),      # encoder layer 1
        (intermediate_dim1, hidden_dim_ae),  # encoder layer 2
        (hidden_dim_ae, intermediate_dim1),  # decoder layer 1
        (intermediate_dim1, input_dim),      # decoder layer 2
    ]
    params = []
    for (fan_in, fan_out) in dims:
        key, kw, kb = jax.random.split(key, 3)
        bound = 1.0 / jnp.sqrt(jnp.float32(fan_in))
        w = jax.random.uniform(kw, (fan_in, fan_out), jnp.float32, -bound, bound)
        b = jax.random.uniform(kb, (1, fan_out), jnp.float32, -bound, bound)
        params.append((w, b))
    return params


def reference_forward(x, params):
    (w1, b1), (w2, b2), (w3, b3), (w4, b4) = params
    a1 = jnp.maximum(x @ w1 + b1, 0.0)
    h = a1 @ w2 + b2
    a2 = jnp.maximum(h @ w3 + b3, 0.0)
    out = a2 @ w4 + b4
    return out, h


if __name__ == "__main__":
    input_dim = 256
    hidden_dim_ae = 32
    batch = 64

    key = jax.random.PRNGKey(0)
    key, kx = jax.random.split(key)
    x = jax.random.normal(kx, (batch, input_dim), jnp.float32)
    params = init_params(key, input_dim, hidden_dim_ae)

    # fp32 path (bit-comparable with the PyTorch fp32 reference).
    out, h = autoencoder_dekm_forward(x, params)
    jax.block_until_ready((out, h))

    out_ref, h_ref = reference_forward(x, params)
    assert out.shape == (batch, input_dim) and h.shape == (batch, hidden_dim_ae)
    assert jnp.allclose(out, out_ref, atol=1e-5, rtol=1e-5)
    assert jnp.allclose(h, h_ref, atol=1e-5, rtol=1e-5)

    # bf16-operand / fp32-accumulate fast path (for v5e / v7x MXU-bound regimes).
    out_bf, h_bf = autoencoder_dekm_forward(x, params, use_bf16=True)
    jax.block_until_ready((out_bf, h_bf))
    assert float(jnp.max(jnp.abs(out_bf - out_ref))) < 5e-2
    assert float(jnp.max(jnp.abs(h_bf - h_ref))) < 5e-2

    print("KERNEL_OK")
</pallas_src>

<mosaic_0001>
module attributes {stable_mosaic.version = 11 : i64} {
  func.func @_ae_kernel(%arg0: i32, %arg1: memref<32x256xf32, #tpu.memory_space<vmem>>, %arg2: memref<256x128xf32, #tpu.memory_space<vmem>>, %arg3: memref<1x128xf32, #tpu.memory_space<vmem>>, %arg4: memref<128x32xf32, #tpu.memory_space<vmem>>, %arg5: memref<1x32xf32, #tpu.memory_space<vmem>>, %arg6: memref<32x128xf32, #tpu.memory_space<vmem>>, %arg7: memref<1x128xf32, #tpu.memory_space<vmem>>, %arg8: memref<128x256xf32, #tpu.memory_space<vmem>>, %arg9: memref<1x256xf32, #tpu.memory_space<vmem>>, %arg10: memref<32x256xf32, #tpu.memory_space<vmem>>, %arg11: memref<32x32xf32, #tpu.memory_space<vmem>>) attributes {dimension_semantics = [#tpu.dimension_semantics<parallel>], iteration_bounds = array<i64: 2>, scalar_prefetch = 0 : i64, scratch_operands = 0 : i64, tpu.core_type = #tpu.core_type<tc>, window_params = [{transform_indices = @transform_0, window_bounds = array<i64: 32, 256>}, {pipeline_mode = #tpu.pipeline_mode<synchronous>, transform_indices = @transform_1, window_bounds = array<i64: 256, 128>}, {pipeline_mode = #tpu.pipeline_mode<synchronous>, transform_indices = @transform_2, window_bounds = array<i64: 1, 128>}, {pipeline_mode = #tpu.pipeline_mode<synchronous>, transform_indices = @transform_3, window_bounds = array<i64: 128, 32>}, {pipeline_mode = #tpu.pipeline_mode<synchronous>, transform_indices = @transform_4, window_bounds = array<i64: 1, 32>}, {pipeline_mode = #tpu.pipeline_mode<synchronous>, transform_indices = @transform_5, window_bounds = array<i64: 32, 128>}, {pipeline_mode = #tpu.pipeline_mode<synchronous>, transform_indices = @transform_6, window_bounds = array<i64: 1, 128>}, {pipeline_mode = #tpu.pipeline_mode<synchronous>, transform_indices = @transform_7, window_bounds = array<i64: 128, 256>}, {pipeline_mode = #tpu.pipeline_mode<synchronous>, transform_indices = @transform_8, window_bounds = array<i64: 1, 256>}, {transform_indices = @transform_9, window_bounds = array<i64: 32, 256>}, {transform_indices = @transform_10, window_bounds = array<i64: 32, 32>}]} {
    %c0 = arith.constant 0 : index
    %c0_0 = arith.constant 0 : index
    %0 = vector.load %arg1[%c0, %c0_0] : memref<32x256xf32, #tpu.memory_space<vmem>>, vector<32x256xf32>
    %c0_1 = arith.constant 0 : index
    %c0_2 = arith.constant 0 : index
    %1 = vector.load %arg3[%c0_1, %c0_2] : memref<1x128xf32, #tpu.memory_space<vmem>>, vector<1x128xf32>
    %c0_3 = arith.constant 0 : index
    %c0_4 = arith.constant 0 : index
    %2 = vector.load %arg5[%c0_3, %c0_4] : memref<1x32xf32, #tpu.memory_space<vmem>>, vector<1x32xf32>
    %c0_5 = arith.constant 0 : index
    %c0_6 = arith.constant 0 : index
    %3 = vector.load %arg7[%c0_5, %c0_6] : memref<1x128xf32, #tpu.memory_space<vmem>>, vector<1x128xf32>
    %c0_7 = arith.constant 0 : index
    %c0_8 = arith.constant 0 : index
    %4 = vector.load %arg9[%c0_7, %c0_8] : memref<1x256xf32, #tpu.memory_space<vmem>>, vector<1x256xf32>
    %c0_9 = arith.constant 0 : index
    %c0_10 = arith.constant 0 : index
    %5 = vector.load %arg2[%c0_9, %c0_10] : memref<256x128xf32, #tpu.memory_space<vmem>>, vector<256x128xf32>
    %cst = arith.constant dense<0.000000e+00> : vector<32x128xf32>
    %6 = tpu.matmul %0, %5, %cst {dimension_numbers = #tpu.dot_dimension_numbers<[1], [0], [0], [1], [0, 0, 1, 1], [], []>} : vector<32x256xf32>, vector<256x128xf32>, vector<32x128xf32> -> vector<32x128xf32>
    %7 = vector.broadcast %1 : vector<1x128xf32> to vector<32x128xf32>
    %8 = arith.addf %6, %7 : vector<32x128xf32>
    %cst_11 = arith.constant 0.000000e+00 : f32
    %9 = vector.broadcast %cst_11 : f32 to vector<32x128xf32>
    %10 = arith.maximumf %8, %9 : vector<32x128xf32>
    %c0_12 = arith.constant 0 : index
    %c0_13 = arith.constant 0 : index
    %11 = vector.load %arg4[%c0_12, %c0_13] : memref<128x32xf32, #tpu.memory_space<vmem>>, vector<128x32xf32>
    %cst_14 = arith.constant dense<0.000000e+00> : vector<32x32xf32>
    %12 = tpu.matmul %10, %11, %cst_14 {dimension_numbers = #tpu.dot_dimension_numbers<[1], [0], [0], [1], [0, 0, 1, 1], [], []>} : vector<32x128xf32>, vector<128x32xf32>, vector<32x32xf32> -> vector<32x32xf32>
    %13 = vector.broadcast %2 : vector<1x32xf32> to vector<32x32xf32>
    %14 = arith.addf %12, %13 : vector<32x32xf32>
    %c0_15 = arith.constant 0 : index
    %c0_16 = arith.constant 0 : index
    %15 = vector.load %arg11[%c0_15, %c0_16] : memref<32x32xf32, #tpu.memory_space<vmem>>, vector<32x32xf32>
    tpu.vector_store %arg11[%c0_15, %c0_16], %14 {strides = array<i32>} : memref<32x32xf32, #tpu.memory_space<vmem>>, vector<32x32xf32>,
    %c0_17 = arith.constant 0 : index
    %c0_18 = arith.constant 0 : index
    %16 = vector.load %arg6[%c0_17, %c0_18] : memref<32x128xf32, #tpu.memory_space<vmem>>, vector<32x128xf32>
    %cst_19 = arith.constant dense<0.000000e+00> : vector<32x128xf32>
    %17 = tpu.matmul %14, %16, %cst_19 {dimension_numbers = #tpu.dot_dimension_numbers<[1], [0], [0], [1], [0, 0, 1, 1], [], []>} : vector<32x32xf32>, vector<32x128xf32>, vector<32x128xf32> -> vector<32x128xf32>
    %18 = vector.broadcast %3 : vector<1x128xf32> to vector<32x128xf32>
    %19 = arith.addf %17, %18 : vector<32x128xf32>
    %cst_20 = arith.constant 0.000000e+00 : f32
    %20 = vector.broadcast %cst_20 : f32 to vector<32x128xf32>
    %21 = arith.maximumf %19, %20 : vector<32x128xf32>
    %c0_21 = arith.constant 0 : index
    %c0_22 = arith.constant 0 : index
    %22 = vector.load %arg8[%c0_21, %c0_22] : memref<128x256xf32, #tpu.memory_space<vmem>>, vector<128x256xf32>
    %cst_23 = arith.constant dense<0.000000e+00> : vector<32x256xf32>
    %23 = tpu.matmul %21, %22, %cst_23 {dimension_numbers = #tpu.dot_dimension_numbers<[1], [0], [0], [1], [0, 0, 1, 1], [], []>} : vector<32x128xf32>, vector<128x256xf32>, vector<32x256xf32> -> vector<32x256xf32>
    %24 = vector.broadcast %4 : vector<1x256xf32> to vector<32x256xf32>
    %25 = arith.addf %23, %24 : vector<32x256xf32>
    %c0_24 = arith.constant 0 : index
    %c0_25 = arith.constant 0 : index
    %26 = vector.load %arg10[%c0_24, %c0_25] : memref<32x256xf32, #tpu.memory_space<vmem>>, vector<32x256xf32>
    tpu.vector_store %arg10[%c0_24, %c0_25], %25 {strides = array<i32>} : memref<32x256xf32, #tpu.memory_space<vmem>>, vector<32x256xf32>,
    return
  }
  func.func @transform_0(%arg0: i32) -> (i32, i32) {
    %c0_i32 = arith.constant 0 : i32
    %c0_i32_0 = arith.constant 0 : i32
    return %arg0, %c0_i32 : i32, i32
  }
  func.func @transform_1(%arg0: i32) -> (i32, i32) {
    %c0_i32 = arith.constant 0 : i32
    %c0_i32_0 = arith.constant 0 : i32
    %c0_i32_1 = arith.constant 0 : i32
    return %c0_i32, %c0_i32_0 : i32, i32
  }
  func.func @transform_2(%arg0: i32) -> (i32, i32) {
    %c0_i32 = arith.constant 0 : i32
    %c0_i32_0 = arith.constant 0 : i32
    %c0_i32_1 = arith.constant 0 : i32
    return %c0_i32, %c0_i32_0 : i32, i32
  }
  func.func @transform_3(%arg0: i32) -> (i32, i32) {
    %c0_i32 = arith.constant 0 : i32
    %c0_i32_0 = arith.constant 0 : i32
    %c0_i32_1 = arith.constant 0 : i32
    return %c0_i32, %c0_i32_0 : i32, i32
  }
  func.func @transform_4(%arg0: i32) -> (i32, i32) {
    %c0_i32 = arith.constant 0 : i32
    %c0_i32_0 = arith.constant 0 : i32
    %c0_i32_1 = arith.constant 0 : i32
    return %c0_i32, %c0_i32_0 : i32, i32
  }
  func.func @transform_5(%arg0: i32) -> (i32, i32) {
    %c0_i32 = arith.constant 0 : i32
    %c0_i32_0 = arith.constant 0 : i32
    %c0_i32_1 = arith.constant 0 : i32
    return %c0_i32, %c0_i32_0 : i32, i32
  }
  func.func @transform_6(%arg0: i32) -> (i32, i32) {
    %c0_i32 = arith.constant 0 : i32
    %c0_i32_0 = arith.constant 0 : i32
    %c0_i32_1 = arith.constant 0 : i32
    return %c0_i32, %c0_i32_0 : i32, i32
  }
  func.func @transform_7(%arg0: i32) -> (i32, i32) {
    %c0_i32 = arith.constant 0 : i32
    %c0_i32_0 = arith.constant 0 : i32
    %c0_i32_1 = arith.constant 0 : i32
    return %c0_i32, %c0_i32_0 : i32, i32
  }
  func.func @transform_8(%arg0: i32) -> (i32, i32) {
    %c0_i32 = arith.constant 0 : i32
    %c0_i32_0 = arith.constant 0 : i32
    %c0_i32_1 = arith.constant 0 : i32
    return %c0_i32, %c0_i32_0 : i32, i32
  }
  func.func @transform_9(%arg0: i32) -> (i32, i32) {
    %c0_i32 = arith.constant 0 : i32
    %c0_i32_0 = arith.constant 0 : i32
    return %arg0, %c0_i32 : i32, i32
  }
  func.func @transform_10(%arg0: i32) -> (i32, i32) {
    %c0_i32 = arith.constant 0 : i32
    %c0_i32_0 = arith.constant 0 : i32
    return %arg0, %c0_i32 : i32, i32
  }
}

</mosaic_0001>

<bundles_post_ra>
// kernel: autoencoder_dekm_forward.1
= control target key start
LH: loop header
LB: loop body
LE: loop exit
PB: predicated region body
PF: predicated region fallthrough
CT: control target
= control target key end

     0   :  { %16 = vsyncpa [#allocation3], 0  ;;  %s1852_s0 = inlined_call_operand.vmem [shape: f32[64,256], index: 0, kind: input, shape index: {}]   ;;  %s1853_s1 = inlined_call_operand.hbm [shape: f32[256,128], index: 1, kind: input, shape index: {}]   ;;  %s1854_s2 = inlined_call_operand.vmem [shape: f32[1,128], index: 2, kind: input, shape index: {}]   ;;  %s1855_s3 = inlined_call_operand.vmem [shape: f32[128,32], index: 3, kind: input, shape index: {}]   ;;  %s1856_s4 = inlined_call_operand.vmem [shape: f32[1,32], index: 4, kind: input, shape index: {}]   ;;  %s1857_s5 = inlined_call_operand.vmem [shape: f32[32,128], index: 5, kind: input, shape index: {}]   ;;  %s1858_s6 = inlined_call_operand.vmem [shape: f32[1,128], index: 6, kind: input, shape index: {}]   ;;  %s1859_s7 = inlined_call_operand.hbm [shape: f32[128,256], index: 7, kind: input, shape index: {}]   ;;  %s1860_s8 = inlined_call_operand.vmem [shape: f32[1,256], index: 8, kind: input, shape index: {}]   ;;  %s1861_s9 = inlined_call_operand.hbm [shape: f32[64,256], index: 9, kind: output, shape index: {0}]   ;;  %s1862_s10 = inlined_call_operand.vmem [shape: f32[64,32], index: 10, kind: output, shape index: {1}]  }
   0x1   :  { %17 = vsyncpa [#allocation6], 0 }
   0x2   :  { %18 = vsyncpa [#allocation4], 0 }
   0x3   :  { %20 = vsyncpa [#allocation4 + $0x1], 0  ;;  %s1577_s13 = smov 0   ;;  %s1579_s14 = smov 0  }
   0x4   :  { %s1581_s15 = smov 0   ;;  %s1583_s16 = smov 0  }
   0x5 LB: > { %1870 = sst [smem:[#allocation11_spill]] %s1506_s15  ;;  %s1598_s17 = sadd.s32 4294967295, %s1510_s16   ;;  %s1510_s16 = sphi %s1583_s16, %s1886_s16   ;;  %s1506_s15 = sphi %s1581_s15, %s1891_s15   ;;  %s1502_s14 = sphi %s1579_s14, %s1890_s14   ;;  %s1498_s13 = sphi %s1577_s13, %s1889_s13  }
   0x6   : > { %s1043_s18 = sadd.s32 4294967294, %s1510_s16   ;;  %s1602_s19 = sadd.s32 1, %s1510_s16  }
   0x7   : > { %1871 = sst [smem:[#allocation12_spill]] %s1602_s19  ;;  %s227_s20 = sadd.s32 1, %s1506_s15 }
   0x8   : > { %s224_s21 = ssub.s32 %s1510_s16, %s1602_s19  ;;  %p237_p0 = scmp.ne.s32.totalorder %s1506_s15, %s1502_s14 }
   0x9   : > { %p225_p1 = scmp.eq.s32.totalorder %s224_s21, 0  ;;  %p238_p2 = scmp.eq.s32.totalorder %s1598_s17, 1 }
   0xa   : > { %p243_p3 = scmp.ne.s32.totalorder %s1502_s14, %s1498_s13  ;;  %p244_p4 = scmp.eq.s32.totalorder %s1043_s18, 1 }
   0xb   : > { %s1613_s22 = scalar_select %p225_p1, %s1506_s15, %s227_s20  }
   0xc   : > { %p1615_p5 = por %p238_p2, %p237_p0  ;;  %p1619_p6 = por %p244_p4, %p243_p3 }
   0xd   : > { %1872 = sst [smem:[#allocation13_spill]] %s1613_s22  ;;  %p1044_p7 = scmp.ge.s32.totalorder %s1510_s16, 1 }
   0xe   : > { %s1873_s23 = scalar_select %p1615_p5, 1, 0 }
   0xf   : > { %s1874_s24 = scalar_select %p1619_p6, 1, 0 }
  0x10   : > { %p277_p8 = scmp.lt.s32.totalorder %s1510_s16, 3  ;;  %p1863_p9 = scmp.eq.s32.totalorder %s1598_s17, 0 }
  0x11   : > { %1875 = sst [smem:[#allocation14_spill]] %s1874_s24  ;;  %s1512_s26 = smov [#allocation2]  }
  0x12   : > { %p1626_p10 = pnand %p1044_p7, %p277_p8  ;;  %s289_s27 = sshll.u32 %s1512_s26, 4  ;;  %s290_s27 = int_to_ptr.vmem [resolvable:$true] %s289_s27 }
  0x13   : > { %s1513_s29 = smov [#allocation5]   ;;  %s1384_s18 = scalar_lea.hbm %s1853_s1, 4096 }
  0x14   : > { %s1876_s25 = scalar_select %p1626_p10, 1, 0 }
  0x15   : > { %p1327_p11 = pneg %p1626_p10  ;;  %s317_s30 = sshll.u32 %s1513_s29, 4  ;;  %s1638_s30 = int_to_ptr.vmem [resolvable:$true] %s317_s30 }
  0x16   : > { %p1385_p13 = scmp.ne.s32.totalorder %s1853_s1, %s1384_s18  ;;  %p1391_p3 = scmp.lt.u32.totalorder %s1384_s18, %s1853_s1 }
  0x17   : > { %p1634_p12 = pnand %p1863_p9, %p1327_p11 }
  0x19   : > { %p1386_p0 = pneg %p1634_p12 }
  0x1b   : > { %p1387_p1 = pnand %p1386_p0, %p1385_p13 }
  0x1d   : > { %p1388_p2 = pneg %p1387_p1 }
  0x1f   : > { %p1393_p4 = pnand %p1391_p3, %p1388_p2 }
  0x21   : > { %1396 = shalt.err (!%p1393_p4)
}
  0x22   : > { %s1397_s29 = scalar_lea.vmem %s290_s27, 4096  ;;  %p1405_p9 = scmp.lt.s32.totalorder %s290_s27, %s290_s27 }
  0x23   : > { %p1398_p7 = scmp.ne.s32.totalorder %s290_s27, %s1397_s29  ;;  %p1406_p6 = scmp.lt.s32.totalorder %s1397_s29, %s1397_s29 }
  0x25   : > { %p1400_p8 = pnand %p1398_p7, %p1386_p0  ;;  %p1407_p5 = por %p1406_p6, %p1405_p9 }
  0x27   : > { %p1401_p11 = pneg %p1400_p8 }
  0x29   : > { %p1408_p10 = pnand %p1407_p5, %p1401_p11 }
  0x2b   : > { %1411 = shalt.err (!%p1408_p10)
}
  0x2c   : > { %s1514_s11 = smov 128   ;;  %s1515_s12 = smov 8  }
  0x2d   : > { %1330 = dma.hbm_to_vmem [thread:$0]  (!%p1634_p12), %s1853_s1, 4096, %s290_s27, [#allocation3], %s1514_s11, %s1514_s11, %s1515_s12  }
  0x2e   : > { %s1412_s26 = scalar_lea.hbm %s1859_s7, 4096 }
  0x2f   : > { %p1413_p13 = scmp.ne.s32.totalorder %s1859_s7, %s1412_s26  ;;  %p1419_p9 = scmp.lt.u32.totalorder %s1412_s26, %s1859_s7 }
  0x31   : > { %p1415_p5 = pnand %p1413_p13, %p1386_p0 }
  0x33   : > { %p1416_p6 = pneg %p1415_p5 }
  0x35   : > { %p1421_p10 = pnand %p1419_p9, %p1416_p6 }
  0x37   : > { %1424 = shalt.err (!%p1421_p10)
}
  0x38   : > { %s1425_s27 = scalar_lea.vmem %s1638_s30, 4096  ;;  %p1433_p4 = scmp.lt.s32.totalorder %s1638_s30, %s1638_s30 }
  0x39   : > { %p1426_p1 = scmp.ne.s32.totalorder %s1638_s30, %s1425_s27  ;;  %p1434_p7 = scmp.lt.s32.totalorder %s1425_s27, %s1425_s27 }
  0x3b   : > { %p1428_p2 = pnand %p1426_p1, %p1386_p0  ;;  %p1435_p8 = por %p1434_p7, %p1433_p4 }
  0x3d   : > { %p1429_p3 = pneg %p1428_p2 }
  0x3f   : > { %p1436_p11 = pnand %p1435_p8, %p1429_p3 }
  0x41   : > { %1439 = shalt.err (!%p1436_p11)
}
  0x42   : > { %s1516_s15 = smov 256   ;;  %s1517_s19 = smov 16  }
  0x43   : > { %1333 = dma.hbm_to_vmem [thread:$0]  (!%p1634_p12), %s1859_s7, 4096, %s1638_s30, [#allocation6], %s1516_s15, %s1516_s15, %s1517_s19  }
  0x44   : > { %p1878_p13 = scmp.ne.s32.totalorder %s1876_s25, 0 }
  0x45   : > { %p1879_p0 = scmp.eq.s32.totalorder (!%p1878_p13), %s1598_s17, 0 }
  0x46   : > { %346 = sbr.rel (%p1878_p13) target bundleno = 1010 (0x3f2), region = 56 }
  0x4d   : > { %1485 = dma.done.wait (%p1879_p0), [#allocation3], 4096   ;;  %p1880_p5 = pmov %p1879_p0 }
  0x4e   : > { %p1881_p6 = pmov %p1879_p0 }
  0x4f   : > { %1487 = vsyncadd (%p1880_p5), [#allocation3], 4294963200 }
  0x50   : > { %1489 = dma.done.wait (%p1881_p6), [#allocation6], 4096   ;;  %p1882_p9 = pmov %p1879_p0 }
  0x51   : > { %s1052_s28 = sshll.u32 %s1598_s17, 2  ;;  %v436_v0 = vld [vmem:[#allocation2 + $0x80] sm:$0xff]  ;;  %v437_v1 = vld [vmem:[#allocation2 + $0x88] sm:$0xff]  ;;  %v438_v5 = vld [vmem:[#allocation2 + $0x90] sm:$0xff]  ;;  %vm654_vm0 = vcmask 261120   ;;  %s384_s24 = sand.u32 1, %s1502_s14  }
  0x52   : > { %1491 = vsyncadd (%p1882_p9), [#allocation6], 4294963200  ;;  %p395_p10 = scmp.lt.s32.totalorder %s1052_s28, 7  ;;  %v420_v2 = vld [vmem:[#allocation2] sm:$0xff]  ;;  %v1197_v3 = vpack.c.bf16 %v437_v1, %v436_v0  ;;  %v421_v4 = vld [vmem:[#allocation2 + $0x8] sm:$0xff]  ;;  %s1051_s30 = sshll.u32 %s384_s24, 6 }
  0x53   : > { %v439_v6 = vld [vmem:[#allocation2 + $0x98] sm:$0xff]  ;;  %v1199_v7 = vpack.c.bf16 %v421_v4, %v420_v2  ;;  %v422_v9 = vld [vmem:[#allocation2 + $0x10] sm:$0xff]  ;;  %v440_v11 = vld [vmem:[#allocation2 + $0xa0] sm:$0xff]  ;;  %s386_s12 = scalar_lea.vmem [#allocation7], %s1051_s30  ;;  %s1072_s20 = sshll.u32 %s1598_s17, 10 }
  0x54   : > { %s1893_s28 = smov (!%p395_p10, %s1052_s28), 7  ;;  %v1201_v8 = vpack.c.bf16 %v439_v6, %v438_v5  ;;  %v423_v10 = vld [vmem:[#allocation2 + $0x18] sm:$0xff]  ;;  %1198 = vmatprep.subr.bf16.mxu0 %v1197_v3  ;;  %v441_v12 = vld [vmem:[#allocation2 + $0xa8] sm:$0xff]  ;;  %v424_v15 = vld [vmem:[#allocation2 + $0x20] sm:$0xff]  ;;  %s930_s18 = sshll.u32 %s386_s12, 4  ;;  %s1802_s18 = int_to_ptr.vmem [resolvable:$true] %s930_s18 }
  0x55   : > { %1200 = vmatpush3.bf16.msra.mxu0 %v1199_v7  ;;  %v1203_v13 = vpack.c.bf16 %v423_v10, %v422_v9  ;;  %s1070_s25 = sshll.u32 %s1893_s28, 4  ;;  %v1205_v14 = vpack.c.bf16 %v441_v12, %v440_v11  ;;  %v425_v16 = vld [vmem:[#allocation2 + $0x28] sm:$0xff]  ;;  %v442_v17 = vld [vmem:[#allocation2 + $0xb0] sm:$0xff]  ;;  %v443_v18 = vld [vmem:[#allocation2 + $0xb8] sm:$0xff]  ;;  %s1807_s17 = scalar_lea.hbm %s1861_s9, %s1072_s20 }
  0x56   : > { %1202 = vmatprep.subr.bf16.mxu0 %v1201_v8  ;;  %s1704_s22 = scalar_lea.vmem %s1852_s0, %s1070_s25  ;;  %v1207_v19 = vpack.c.bf16 %v425_v16, %v424_v15  ;;  %v1209_v20 = vpack.c.bf16 %v443_v18, %v442_v17  ;;  %v426_v21 = vld [vmem:[#allocation2 + $0x30] sm:$0xff]  ;;  %v427_v22 = vld [vmem:[#allocation2 + $0x38] sm:$0xff]  ;;  %v444_v23 = vld [vmem:[#allocation2 + $0xc0] sm:$0xff]  ;;  %s1811_s26 = scalar_lea.sflag [#allocation4], %s384_s24 }
  0x57   : > { %v445_v24 = vld [vmem:[#allocation2 + $0xc8] sm:$0xff]  ;;  %v1211_v26 = vpack.c.bf16 %v427_v22, %v426_v21  ;;  %v428_v27 = vld [vmem:[#allocation2 + $0x40] sm:$0xff]  ;;  %v446_v30 = vld [vmem:[#allocation2 + $0xd0] sm:$0xff]  ;;  %s1440_s29 = scalar_lea.vmem %s1802_s18, 1024  ;;  %p1883_p1 = scmp.ne.s32.totalorder %s1873_s23, 0 }
  0x58   : > { %v409_v25 = vld [vmem:[%s1704_s22 + $0x8] sm:$0xff]  ;;  %v1213_v29 = vpack.c.bf16 %v445_v24, %v444_v23  ;;  %v547_v31 = vld [vmem:[%s1855_s3] sm:$0xff]  ;;  %v447_v33 = vld [vmem:[#allocation2 + $0xd8] sm:$0xff]  ;;  %p1441_p12 = scmp.ne.s32.totalorder %s1802_s18, %s1440_s29  ;;  %s1519_s27 = smov [#allocation7]  }
  0x59   : > { %1204 = vmatpush3.bf16.msra.mxu0 %v1203_v13  ;;  %522 = vmatprep.mubr.f32.mxu0 %v409_v25  ;;  %v429_v28 = vld [vmem:[#allocation2 + $0x48] sm:$0xff]  ;;  %v549_v35 = vld [vmem:[%s1855_s3 + $0x10] sm:$0xff]  ;;  %v550_v36 = vld [vmem:[%s1855_s3 + $0x18] sm:$0xff]  ;;  %v1217_v41 = vpack.c.bf16 %v447_v33, %v446_v30 }
  0x5a   : > { %1206 = vmatprep.subr.bf16.mxu0 %v1205_v14  ;;  %v548_v32 = vld [vmem:[%s1855_s3 + $0x8] sm:$0xff]  ;;  %v1233_v37 = vpack.c.bf16 %v550_v36, %v549_v35  ;;  %v551_v38 = vld [vmem:[%s1855_s3 + $0x20] sm:$0xff]  ;;  %v1215_v40 = vpack.c.bf16 %v429_v28, %v428_v27  ;;  %v430_v42 = vld [vmem:[#allocation2 + $0x50] sm:$0xff]  ;;  %p1442_p2 = pnand %p1441_p12, %p1883_p1 }
  0x5b   : > { %v1229_v34 = vpack.c.bf16 %v548_v32, %v547_v31  ;;  %v552_v39 = vld [vmem:[%s1855_s3 + $0x28] sm:$0xff]  ;;  %v431_v43 = vld [vmem:[#allocation2 + $0x58] sm:$0xff]  ;;  %v448_v44 = vld [vmem:[#allocation2 + $0xe0] sm:$0xff] }
  0x5c   : > { %v449_v45 = vld [vmem:[#allocation2 + $0xe8] sm:$0xff]  ;;  %v1237_v46 = vpack.c.bf16 %v552_v39, %v551_v38  ;;  %v553_v47 = vld [vmem:[%s1855_s3 + $0x30] sm:$0xff]  ;;  %v554_v48 = vld [vmem:[%s1855_s3 + $0x38] sm:$0xff]  ;;  %v1219_v49 = vpack.c.bf16 %v431_v43, %v430_v42  ;;  %p1443_p3 = pneg %p1442_p2 }
  0x5d   : > { %1208 = vmatpush3.bf16.msra.mxu0 %v1207_v19  ;;  %1230 = vmatprep.subr.bf16.mxu1 %v1229_v34  ;;  %v1221_v50 = vpack.c.bf16 %v449_v45, %v448_v44  ;;  %v432_v51 = vld [vmem:[#allocation2 + $0x60] sm:$0xff]  ;;  %v433_v52 = vld [vmem:[#allocation2 + $0x68] sm:$0xff]  ;;  %v450_v53 = vld [vmem:[#allocation2 + $0xf0] sm:$0xff]  ;;  %v1241_v55 = vpack.c.bf16 %v554_v48, %v553_v47 }
  0x5e   : > { %1210 = vmatprep.subr.bf16.mxu0 %v1209_v20  ;;  %1232 = vmatpush3.bf16.msra.mxu1 %v1229_v34  ;;  %v451_v54 = vld [vmem:[#allocation2 + $0xf8] sm:$0xff]  ;;  %v555_v56 = vld [vmem:[%s1855_s3 + $0x40] sm:$0xff]  ;;  %v556_v57 = vld [vmem:[%s1855_s3 + $0x48] sm:$0xff]  ;;  %v1223_v58 = vpack.c.bf16 %v433_v52, %v432_v51 }
  0x5f   : > { %1234 = vmatprep.subr.bf16.mxu1 %v1233_v37  ;;  %v1225_v59 = vpack.c.bf16 %v451_v54, %v450_v53  ;;  %v434_v60 = vld [vmem:[#allocation2 + $0x70] sm:$0xff]  ;;  %v435_v61 = vld [vmem:[#allocation2 + $0x78] sm:$0xff]  ;;  %v1245_v62 = vpack.c.bf16 %v556_v57, %v555_v56  ;;  %v408_v0 = vld [vmem:[%s1704_s22] sm:$0xff] }
  0x60   : > { %v1227_v63 = vpack.c.bf16 %v435_v61, %v434_v60  ;;  %v411_v1 = vld [vmem:[%s1704_s22 + $0x18] sm:$0xff]  ;;  %v410_v2 = vld [vmem:[%s1704_s22 + $0x10] sm:$0xff]  ;;  %v413_v3 = vld [vmem:[%s1704_s22 + $0x28] sm:$0xff] }
  0x61   : > { %1212 = vmatpush3.bf16.msra.mxu0 %v1211_v26  ;;  %v412_v4 = vld [vmem:[%s1704_s22 + $0x20] sm:$0xff]  ;;  %v415_v5 = vld [vmem:[%s1704_s22 + $0x38] sm:$0xff]  ;;  %v414_v6 = vld [vmem:[%s1704_s22 + $0x30] sm:$0xff]  ;;  %s1056_s22 = sshll.u32 %s1893_s28, 3 }
  0x62   : > { %1214 = vmatprep.subr.bf16.mxu0 %v1213_v29  ;;  %1236 = vmatpush3.bf16.msra.mxu1 %v1233_v37  ;;  %v557_v7 = vld [vmem:[%s1855_s3 + $0x50] sm:$0xff]  ;;  %v558_v8 = vld [vmem:[%s1855_s3 + $0x58] sm:$0xff]  ;;  %v559_v10 = vld [vmem:[%s1855_s3 + $0x60] sm:$0xff]  ;;  %s406_s15 = scalar_lea.vmem %s1862_s10, %s1056_s22 }
  0x63   : > { %1238 = vmatprep.subr.bf16.mxu1 %v1237_v46  ;;  %v1249_v9 = vpack.c.bf16 %v558_v8, %v557_v7  ;;  %v560_v11 = vld [vmem:[%s1855_s3 + $0x68] sm:$0xff]  ;;  %v561_v13 = vld [vmem:[%s1855_s3 + $0x70] sm:$0xff]  ;;  %v562_v14 = vld [vmem:[%s1855_s3 + $0x78] sm:$0xff] }
  0x64   : > { %v1253_v12 = vpack.c.bf16 %v560_v11, %v559_v10  ;;  %v1257_v15 = vpack.c.bf16 %v562_v14, %v561_v13  ;;  %v659_v16 = vld [vmem:[%s1857_s5] sm:$0xff]  ;;  %v660_v17 = vld [vmem:[%s1857_s5 + $0x8] sm:$0xff]  ;;  %v773_v44 = vld [vmem:[#allocation5 + $0x18] sm:$0xff] }
  0x65   : > { %1216 = vmatpush3.bf16.msra.mxu0 %v1215_v40  ;;  %v1261_v18 = vpack.c.bf16 %v660_v17, %v659_v16  ;;  %v1057_v21 = vld [vmem:[%s1854_s2] ss:$0 sm:$0xff]  ;;  %v661_v40 = vld [vmem:[%s1857_s5 + $0x10] sm:$0xff]  ;;  %v771_v43 = vld [vmem:[#allocation5 + $0x8] sm:$0xff] }
  0x66   : > { %1218 = vmatprep.subr.bf16.mxu0 %v1217_v41  ;;  %1240 = vmatpush3.bf16.msra.mxu1 %v1237_v46  ;;  %v662_v41 = vld [vmem:[%s1857_s5 + $0x18] sm:$0xff]  ;;  %v770_v45 = vld [vmem:[#allocation5] sm:$0xff]  ;;  %v1269_v46 = vpack.c.bf16 %v773_v44, %v771_v43  ;;  %v772_v47 = vld [vmem:[#allocation5 + $0x10] sm:$0xff] }
  0x67   : > { %1242 = vmatprep.subr.bf16.mxu1 %v1241_v55  ;;  %v1265_v42 = vpack.c.bf16 %v662_v41, %v661_v40  ;;  %v775_v48 = vld [vmem:[#allocation5 + $0x28] sm:$0xff]  ;;  %v774_v52 = vld [vmem:[#allocation5 + $0x20] sm:$0xff]  ;;  %v776_v53 = vld [vmem:[#allocation5 + $0x30] sm:$0xff] }
  0x68   : > { %v779_v54 = vld [vmem:[#allocation5 + $0x48] sm:$0xff]  ;;  %v1275_v56 = vpack.c.bf16 %v776_v53, %v774_v52  ;;  %v785_v61 = vld [vmem:[#allocation5 + $0x78] sm:$0xff]  ;;  %v788_v7 = vld [vmem:[#allocation5 + $0x90] sm:$0xff] }
  0x69   : > { %1220 = vmatpush3.bf16.msra.mxu0 %v1219_v49  ;;  %v777_v49 = vld [vmem:[#allocation5 + $0x38] sm:$0xff]  ;;  %v783_v60 = vld [vmem:[#allocation5 + $0x68] sm:$0xff]  ;;  %v792_v13 = vld [vmem:[#allocation5 + $0xb0] sm:$0xff] }
  0x6a   : > { %1222 = vmatprep.subr.bf16.mxu0 %v1221_v50  ;;  %1244 = vmatpush3.bf16.msra.mxu1 %v1241_v55  ;;  %v1271_v50 = vpack.c.bf16 %v772_v47, %v770_v45  ;;  %v1273_v51 = vpack.c.bf16 %v777_v49, %v775_v48  ;;  %v781_v55 = vld [vmem:[#allocation5 + $0x58] sm:$0xff]  ;;  %v791_v8 = vld [vmem:[#allocation5 + $0xa8] sm:$0xff]  ;;  %v419_v53 = vld [vmem:[%s1860_s8] sm:$0x3] }
  0x6b   : > { %1246 = vmatprep.subr.bf16.mxu1 %v1245_v62  ;;  %v1277_v57 = vpack.c.bf16 %v781_v55, %v779_v54  ;;  %v795_v14 = vld [vmem:[#allocation5 + $0xc8] sm:$0xff] }
  0x6d   : > { %1224 = vmatpush3.bf16.msra.mxu0 %v1223_v58  ;;  %v778_v58 = vld [vmem:[#allocation5 + $0x40] sm:$0xff] }
  0x6e   : > { %1226 = vmatprep.subr.bf16.mxu0 %v1225_v59  ;;  %1248 = vmatpush3.bf16.msra.mxu1 %v1245_v62  ;;  %v780_v59 = vld [vmem:[#allocation5 + $0x50] sm:$0xff] }
  0x6f   : > { %1250 = vmatprep.subr.bf16.mxu1 %v1249_v9  ;;  %v1279_v62 = vpack.c.bf16 %v780_v59, %v778_v58 }
  0x71   : > { %1228 = vmatpush3.bf16.msra.mxu0 %v1227_v63  ;;  %v1281_v63 = vpack.c.bf16 %v785_v61, %v783_v60 }
  0x72   : > { %1252 = vmatpush3.bf16.msra.mxu1 %v1249_v9  ;;  %1270 = vmatprep.subr.bf16.mxu0 %v1269_v46  ;;  %v793_v9 = vld [vmem:[#allocation5 + $0xb8] sm:$0xff] }
  0x73   : > { %1254 = vmatprep.subr.bf16.mxu1 %v1253_v12  ;;  %v1289_v11 = vpack.c.bf16 %v793_v9, %v791_v8 }
  0x74   : > { %523 = vmatmul.mubr.f32.vlgmr.msra.gmra.mrb[0].mxu0 %v408_v0  ;;  %v782_v0 = vld [vmem:[#allocation5 + $0x60] sm:$0xff] }
  0x75   : > { %527 = vmatprep.mubr.f32.mxu0 %v411_v1  ;;  %1272 = vmatpush1.bf16.msra.mxu0 %v1271_v50  ;;  %v784_v1 = vld [vmem:[#allocation5 + $0x70] sm:$0xff] }
  0x76   : > { %1256 = vmatpush3.bf16.msra.mxu1 %v1253_v12  ;;  %1274 = vmatprep.subr.bf16.mxu0 %v1273_v51  ;;  %v790_v12 = vld [vmem:[#allocation5 + $0xa0] sm:$0xff] }
  0x77   : > { %1258 = vmatprep.subr.bf16.mxu1 %v1257_v15  ;;  %v1291_v16 = vpack.c.bf16 %v792_v13, %v790_v12 }
  0x78   : > { %528 = vmatmul.mubr.f32.gmra.mrb[2].mxu0 %v410_v2  ;;  %v787_v2 = vld [vmem:[#allocation5 + $0x88] sm:$0xff] }
  0x79   : > { %532 = vmatprep.mubr.f32.mxu0 %v413_v3  ;;  %1276 = vmatpush1.bf16.msra.mxu0 %v1275_v56  ;;  %v789_v3 = vld [vmem:[#allocation5 + $0x98] sm:$0xff] }
  0x7a   : > { %1260 = vmatpush3.bf16.msra.mxu1 %v1257_v15  ;;  %1278 = vmatprep.subr.bf16.mxu0 %v1277_v57  ;;  %v797_v15 = vld [vmem:[#allocation5 + $0xd8] sm:$0xff] }
  0x7b   : > { %1262 = vmatprep.subr.bf16.mxu1 %v1261_v18  ;;  %v1293_v17 = vpack.c.bf16 %v797_v15, %v795_v14 }
  0x7c   : > { %533 = vmatmul.mubr.f32.gmra.mrb[4].mxu0 %v412_v4  ;;  %v1283_v4 = vpack.c.bf16 %v784_v1, %v782_v0 }
  0x7d   : > { %537 = vmatprep.mubr.f32.mxu0 %v415_v5  ;;  %1280 = vmatpush1.bf16.msra.mxu0 %v1279_v62  ;;  %v1285_v5 = vpack.c.bf16 %v789_v3, %v787_v2 }
  0x7e   : > { %1282 = vmatprep.subr.bf16.mxu0 %v1281_v63 }
  0x80   : > { %538 = vmatmul.mubr.f32.gmra.mrb[6].mxu0 %v414_v6  ;;  %v786_v6 = vld [vmem:[#allocation5 + $0x80] sm:$0xff] }
  0x81   : > { %1284 = vmatpush1.bf16.msra.mxu0 %v1283_v4  ;;  %v1287_v10 = vpack.c.bf16 %v788_v7, %v786_v6 }
  0x82   : > { %1286 = vmatprep.subr.bf16.mxu0 %v1285_v5 }
  0x85   : > { %1288 = vmatpush1.bf16.msra.mxu0 %v1287_v10 }
  0x86   : > { %1290 = vmatprep.subr.bf16.mxu0 %v1289_v11 }
  0x89   : > { %1292 = vmatpush1.bf16.msra.mxu0 %v1291_v16 }
  0x8a   : > { %1294 = vmatprep.subr.bf16.mxu0 %v1293_v17 }
 0x147   : > { %v1105_v19 = vpop.f32.mrb[0].mxu0 }
 0x148   : > { %v1106_v20 = vpop.f32.mrb[1].mxu0 }
 0x149   : > { %v1107_v22 = vadd.f32 %v1106_v20, %v1105_v19  ;;  %v796_v19 = vld [vmem:[#allocation5 + $0xd0] sm:$0xff] }
 0x14b   : > { %v1108_v23 = vpop.f32.mrb[2].mxu0  ;;  %v525_v24 = vadd.f32 %v1107_v22, %v1057_v21 }
 0x14c   : > { %v1109_v25 = vpop.f32.mrb[3].mxu0 }
 0x14d   : > { %v1110_v26 = vadd.f32 %v1109_v25, %v1108_v23  ;;  %v543_v27 = vmax.f32 %v525_v24, 0.0 }
 0x14f   : > { %v530_v28 = vadd.f32 %v1110_v26, %v1057_v21  ;;  %v1111_v29 = vpop.f32.mrb[4].mxu0  ;;  %1177 = vmatprep.mubr.f32.mxu1 %v543_v27 }
 0x150   : > { %v1112_v30 = vpop.f32.mrb[5].mxu0 }
 0x151   : > { %v544_v31 = vmax.f32 %v530_v28, 0.0  ;;  %v1113_v32 = vadd.f32 %v1112_v30, %v1111_v29  ;;  %v799_v30 = vld [vmem:[#allocation5 + $0xe8] sm:$0xff] }
 0x153   : > { %v535_v33 = vadd.f32 %v1113_v32, %v1057_v21  ;;  %v1114_v34 = vpop.f32.mrb[6].mxu0  ;;  %1178 = vmatmul.mubr.f32.vlgmr.msra.gmra.mrb[0].mxu1 %v544_v31  ;;  %v801_v31 = vld [vmem:[#allocation5 + $0xf8] sm:$0xff] }
 0x154   : > { %v1115_v35 = vpop.f32.mrb[7].mxu0  ;;  %1264 = vmatpush3.bf16.msra.mxu1 %v1261_v18  ;;  %v794_v18 = vld [vmem:[#allocation5 + $0xc0] sm:$0xff]  ;;  %v1297_v32 = vpack.c.bf16 %v801_v31, %v799_v30 }
 0x155   : > { %v545_v36 = vmax.f32 %v535_v33, 0.0  ;;  %v1116_v37 = vadd.f32 %v1115_v35, %v1114_v34  ;;  %1266 = vmatprep.subr.bf16.mxu1 %v1265_v42  ;;  %v1295_v20 = vpack.c.bf16 %v796_v19, %v794_v18  ;;  %v798_v33 = vld [vmem:[#allocation5 + $0xe0] sm:$0xff]  ;;  %v800_v34 = vld [vmem:[#allocation5 + $0xf0] sm:$0xff] }
 0x156   : > { %v1299_v35 = vpack.c.bf16 %v800_v34, %v798_v33 }
 0x157   : > { %v540_v38 = vadd.f32 %v1116_v37, %v1057_v21  ;;  %1180 = vmatprep.mubr.f32.mxu1 %v545_v36  ;;  %1296 = vmatpush1.bf16.msra.mxu0 %v1295_v20  ;;  %v1058_v21 = vld [vmem:[%s1856_s4] ss:$0 sm:$0xff]  ;;  %v1518_v36 = vmov 0.0  }
 0x158   : > { %1268 = vmatpush3.bf16.msra.mxu1 %v1265_v42  ;;  %1298 = vmatprep.subr.bf16.mxu0 %v1297_v32  ;;  %v1059_v37 = vld [vmem:[%s1858_s6] ss:$0 sm:$0xff] }
 0x159   : > { %v546_v39 = vmax.f32 %v540_v38, 0.0  ;;  %1301 = vmatprep.subr.bf16.mxu1 %v1269_v46  ;;  %877 = vmatprep.mubr.f32.mxu0 %v1518_v36 }
 0x15b   : > { %1181 = vmatmul.mubr.f32.gmra.mrb[2].mxu1 %v546_v39  ;;  %1300 = vmatpush1.bf16.msra.mxu0 %v1299_v35 }
 0x226   : > { %v1179_v22 = vpop.f32.mrb[0].mxu1 }
 0x227   : > { %v635_v23 = vpop.f32.mrb[1].mxu1  ;;  %v641_v25 = vadd.f32 %v1179_v22, %v1058_v21 }
 0x228   : > { %v636_v24 = vadd.f32 %v1058_v21, %v635_v23 }
 0x229   : > { %656 = vst.msk [vmem:[%s406_s15 + $0x8] sm:$0xff] %vm654_vm0, %v641_v25 }
 0x22a   : > { %655 = vst.msk [vmem:[%s406_s15] sm:$0xff] %vm654_vm0, %v636_v24  ;;  %1191 = vmatprep.mubr.msk.f32.mxu1 %vm654_vm0, %v636_v24 }
 0x22b   : > { %1192 = vmatmul.mubr.msk.f32.vlgmr.msra.gmra.mrb[4].mxu1 %vm654_vm0, %v641_v25 }
 0x22c   : > { %1309 = vmatpush1.bf16.msra.mxu1 %v1271_v50  ;;  %v803_v50 = vlaneseq }
 0x22d   : > { %1302 = vmatprep.subr.bf16.mxu1 %v1273_v51 }
 0x22e   : > { %v1182_v26 = vpop.f32.mrb[2].mxu1  ;;  %v804_v51 = vshrl.u32 %v803_v50, 7 }
 0x22f   : > { %v645_v27 = vpop.f32.mrb[3].mxu1  ;;  %v651_v29 = vadd.f32 %v1182_v26, %v1058_v21 }
 0x230   : > { %v646_v28 = vadd.f32 %v1058_v21, %v645_v27  ;;  %1310 = vmatpush1.bf16.msra.mxu1 %v1275_v56  ;;  %v805_v52 = vsub.s32 0, %v804_v51  ;;  %v809_v54 = vsub.s32 1, %v804_v51 }
 0x231   : > { %1303 = vmatprep.subr.bf16.mxu1 %v1277_v57  ;;  %658 = vst.msk [vmem:[%s406_s15 + $0x18] sm:$0xff] %vm654_vm0, %v651_v29 }
 0x232   : > { %657 = vst.msk [vmem:[%s406_s15 + $0x10] sm:$0xff] %vm654_vm0, %v646_v28  ;;  %1194 = vmatprep.mubr.msk.f32.mxu1 %vm654_vm0, %v646_v28  ;;  %v806_v55 = vrot.slane %v419_v53, %v805_v52  ;;  %v810_v56 = vrot.slane %v419_v53, %v809_v54  ;;  %s1444_s15 = sshll.u32 %s1519_s27, 4  ;;  %s1445_s15 = int_to_ptr.vmem [resolvable:$false] %s1444_s15 }
 0x233   : > { %1195 = vmatmul.mubr.msk.f32.gmra.mrb[6].mxu1 %vm654_vm0, %v651_v29  ;;  %s1446_s28 = scalar_lea.vmem %s1445_s15, 2048  ;;  %p1447_p4 = scmp.lt.s32.totalorder %s1802_s18, %s1445_s15 }
 0x234   : > { %1311 = vmatpush1.bf16.msra.mxu1 %v1279_v62  ;;  %895 = vmatprep.mubr.f32.mxu1 %v1518_v36  ;;  %p1448_p7 = scmp.lt.s32.totalorder %s1446_s28, %s1440_s29 }
 0x235   : > { %1304 = vmatprep.subr.bf16.mxu1 %v1281_v63 }
 0x236   : > { %p1449_p8 = por %p1448_p7, %p1447_p4 }
 0x238   : > { %1312 = vmatpush1.bf16.msra.mxu1 %v1283_v4  ;;  %p1450_p11 = pnand %p1449_p8, %p1443_p3 }
 0x239   : > { %1305 = vmatprep.subr.bf16.mxu1 %v1285_v5 }
 0x23c   : > { %1313 = vmatpush1.bf16.msra.mxu1 %v1287_v10 }
 0x23d   : > { %1306 = vmatprep.subr.bf16.mxu1 %v1289_v11 }
 0x240   : > { %1314 = vmatpush1.bf16.msra.mxu1 %v1291_v16 }
 0x241   : > { %1307 = vmatprep.subr.bf16.mxu1 %v1293_v17 }
 0x244   : > { %1315 = vmatpush1.bf16.msra.mxu1 %v1295_v20 }
 0x245   : > { %1308 = vmatprep.subr.bf16.mxu1 %v1297_v32 }
 0x248   : > { %1316 = vmatpush1.bf16.msra.mxu1 %v1299_v35 }
 0x2fe   : > { %v1193_v38 = vpop.f32.mrb[4].mxu1 }
 0x2ff   : > { %v747_v39 = vpop.f32.mrb[5].mxu1  ;;  %v753_v41 = vadd.f32 %v1193_v38, %v1059_v37 }
 0x300   : > { %v748_v40 = vadd.f32 %v1059_v37, %v747_v39 }
 0x301   : > { %v767_v43 = vmax.f32 %v753_v41, 0.0 }
 0x302   : > { %v766_v42 = vmax.f32 %v748_v40, 0.0 }
 0x304   : > { %878 = vmatmul.mubr.f32.vlgmr.msra.gmra.mrb[8].mxu0 %v766_v42 }
 0x305   : > { %883 = vmatprep.mubr.f32.mxu0 %v1518_v36 }
 0x306   : > { %v1196_v44 = vpop.f32.mrb[6].mxu1 }
 0x307   : > { %v763_v45 = vadd.f32 %v1196_v44, %v1059_v37  ;;  %v757_v46 = vpop.f32.mrb[7].mxu1 }
 0x308   : > { %v758_v47 = vadd.f32 %v1059_v37, %v757_v46  ;;  %884 = vmatmul.mubr.f32.gmra.mrb[10].mxu0 %v767_v43 }
 0x309   : > { %v769_v48 = vmax.f32 %v763_v45, 0.0  ;;  %889 = vmatprep.mubr.f32.mxu0 %v1518_v36 }
 0x30a   : > { %v768_v49 = vmax.f32 %v758_v47, 0.0 }
 0x30b   : > { %896 = vmatmul.mubr.f32.vlgmr.msra.gmra.mrb[8].mxu1 %v769_v48 }
 0x30c   : > { %890 = vmatmul.mubr.f32.gmra.mrb[12].mxu0 %v768_v49 }
 0x3d7   : > { %v879_v57 = vpop.f32.mrb[8].mxu0 }
 0x3d8   : > { %v880_v58 = vadd.f32 %v879_v57, %v806_v55  ;;  %v881_v59 = vpop.f32.mrb[9].mxu0 }
 0x3d9   : > { %v882_v60 = vadd.f32 %v881_v59, %v810_v56 }
 0x3da   : > { %902 = vst [vmem:[%s386_s12] sm:$0xff] %v880_v58 }
 0x3db   : > { %903 = vst [vmem:[%s386_s12 + $0x8] sm:$0xff] %v882_v60  ;;  %v885_v61 = vpop.f32.mrb[10].mxu0 }
 0x3dc   : > { %v886_v62 = vadd.f32 %v885_v61, %v806_v55  ;;  %v887_v63 = vpop.f32.mrb[11].mxu0 }
 0x3dd   : > { %v888_v0 = vadd.f32 %v887_v63, %v810_v56 }
 0x3de   : > { %904 = vst [vmem:[%s386_s12 + $0x10] sm:$0xff] %v886_v62  ;;  %v897_v1 = vpop.f32.mrb[8].mxu1 }
 0x3df   : > { %905 = vst [vmem:[%s386_s12 + $0x18] sm:$0xff] %v888_v0  ;;  %v898_v2 = vadd.f32 %v897_v1, %v806_v55  ;;  %v891_v3 = vpop.f32.mrb[12].mxu0  ;;  %v899_v4 = vpop.f32.mrb[9].mxu1 }
 0x3e0   : > { %v892_v5 = vadd.f32 %v891_v3, %v806_v55  ;;  %v900_v6 = vadd.f32 %v899_v4, %v810_v56  ;;  %v893_v7 = vpop.f32.mrb[13].mxu0 }
 0x3e1   : > { %908 = vst [vmem:[%s386_s12 + $0x30] sm:$0xff] %v898_v2  ;;  %v894_v8 = vadd.f32 %v893_v7, %v810_v56 }
 0x3e2   : > { %906 = vst [vmem:[%s386_s12 + $0x20] sm:$0xff] %v892_v5  ;;  %909 = vst [vmem:[%s386_s12 + $0x38] sm:$0xff] %v900_v6 }
 0x3e3   : > { %907 = vst [vmem:[%s386_s12 + $0x28] sm:$0xff] %v894_v8 }
 0x3e4   : > { %1453 = shalt.err (!%p1450_p11)
}
 0x3e5   : > { %s1454_s19 = scalar_lea.hbm %s1807_s17, 1024  ;;  %s1458_s25 = scalar_lea.hbm %s1861_s9, 2048 }
 0x3e6   : > { %p1455_p13 = scmp.ne.s32.totalorder %s1807_s17, %s1454_s19  ;;  %p1459_p6 = scmp.lt.u32.totalorder %s1807_s17, %s1861_s9 }
 0x3e7   : > { %p1460_p9 = scmp.lt.u32.totalorder %s1458_s25, %s1454_s19  ;;  %p1462_p12 = scmp.lt.u32.totalorder %s1454_s19, %s1807_s17 }
 0x3e8   : > { %p1456_p0 = pnand %p1455_p13, %p1883_p1 }
 0x3e9   : > { %p1461_p10 = por %p1460_p9, %p1459_p6 }
 0x3ea   : > { %p1457_p5 = pneg %p1456_p0 }
 0x3eb   : > { %p1463_p2 = por %p1462_p12, %p1461_p10 }
 0x3ed   : > { %p1464_p3 = pnand %p1463_p2, %p1457_p5 }
 0x3ef   : > { %1467 = shalt.err (!%p1464_p3)
}
 0x3f0   : > { %s1520_s20 = smov 256   ;;  %s1521_s22 = smov 16  }
 0x3f1   : > { %1325 = dma.vmem_to_hbm [thread:$0]  (%p1883_p1), %s1802_s18, 1024, %s1807_s17, %s1811_s26, %s1520_s20, %s1520_s20, %s1521_s22  }
 0x3f2 PF: > { %s1884_s21 = sld [smem:[#allocation14_spill]]  ;;  %p1342_p4 = scmp.ge.s32.totalorder %s1510_s16, 2 }
 0x3f3   : > { %s949_s29 = sand.u32 1, %s1498_s13  }
 0x3f4   : > { %s950_s27 = scalar_lea.sflag [#allocation4], %s949_s29 }
 0x3f8   : > { %p1885_p7 = scmp.ne.s32.totalorder %s1884_s21, 0 }
 0x3fa   : > { %p1335_p8 = pnand %p1342_p4, %p1885_p7 }
 0x3fc   : > { %1493 = dma.done.wait (!%p1335_p8), %s950_s27, 1024  }
 0x3fd   : > { %1495 = vsyncadd (!%p1335_p8), %s950_s27, 4294966272  ;;  %s1886_s16 = sld [smem:[#allocation12_spill]]  ;;  %s1887_s15 = sld [smem:[#allocation11_spill]] }
 0x3fe   : > { %s1888_s28 = sld [smem:[#allocation13_spill]]  ;;  %s1889_s13 = smov %s1502_s14 }
 0x403   : > { %p23_p11 = scmp.ge.s32.totalorder %s1886_s16, 4   ;;  %s1890_s14 = smov %s1887_s15 }
 0x404   : > { %s1891_s15 = smov %s1888_s28 }
 0x405   :  { %25 = sbr.rel (!%p23_p11) target bundleno = 5 (0x5), region = 112 }
 0x40c   :  { %963 = vsyncpa [#allocation3], 1 }
 0x40d   :  { %965 = vsyncpa [#allocation3 + $0x1], 1 }
 0x40e   :  { %966 = vsyncpa [#allocation6], 1 }
 0x40f   :  { %967 = vsyncpa [#allocation4], 1 }
 0x410   :  { %969 = vsyncpa [#allocation4 + $0x1], 1 }

</bundles_post_ra>
